<compile_context>
chip_gen: v5e
topology: v5e:2x2
jax: 0.10.0
libtpu: 0.0.40
codegen_flags: <defaults>
</compile_context>

<pallas_src>
from functools import partial

import jax
import jax.numpy as jnp
from jax.experimental import pallas as pl
from jax.experimental.pallas import tpu as pltpu


def _round_up(n, m):
    return ((n + m - 1) // m) * m


# ---------------------------------------------------------------------------
# Fused kernel: whole autoencoder (encoder + decoder) in one pallas_call.
# ---------------------------------------------------------------------------
def _fused_autoencoder_kernel(x_ref, w_ref, b_ref, out_ref, z_ref, *, n_enc, n_dec):
    # x_ref:   [tile_m, D]              (D = 128-padded feature width)
    # w_ref:   [n_layers, D, D]         (layer l weight, stored [in, out])
    # b_ref:   [n_layers, 1, D]
    # out_ref: [tile_m, D], z_ref: [tile_m, D]
    h = x_ref[...]

    # ---- encoder ----
    for l in range(n_enc):
        h = jnp.dot(h, w_ref[l], preferred_element_type=jnp.float32) + b_ref[l]
        if l != n_enc - 1:
            h = jnp.tanh(h)
    z_ref[...] = h.astype(z_ref.dtype)

    # ---- decoder ----
    for l in range(n_dec):
        li = n_enc + l
        h = jnp.dot(h, w_ref[li], preferred_element_type=jnp.float32) + b_ref[li]
        if l != n_dec - 1:
            h = jnp.tanh(h)
    out_ref[...] = h.astype(out_ref.dtype)


# ---------------------------------------------------------------------------
# One-time parameter packing (hoisted out of the forward path).
# ---------------------------------------------------------------------------
def pack_autoencoder_params(encoder_params, decoder_params, in_features):
    """Pad + stack all layer weights/biases once. Returns (w_stack, b_stack, meta)."""
    params = list(encoder_params) + list(decoder_params)
    n_enc, n_dec = len(encoder_params), len(decoder_params)

    # One common 128-padded feature width for every layer (all widths <= 128 here).
    dims = [in_features] + [w.shape[1] for w, _ in params]
    D = _round_up(max(dims), 128)

    w_stack = jnp.stack([
        jnp.pad(jnp.asarray(w, jnp.float32),
                ((0, D - w.shape[0]), (0, D - w.shape[1])))
        for w, _ in params])
    b_stack = jnp.stack([
        jnp.pad(jnp.asarray(b, jnp.float32), (0, D - b.shape[0]))[None, :]
        for _, b in params])

    meta = dict(
        n_enc=n_enc,
        n_dec=n_dec,
        in_features=in_features,
        bottleneck=encoder_params[-1][0].shape[1],
        out_features=decoder_params[-1][0].shape[1],
    )
    return w_stack, b_stack, meta


# ---------------------------------------------------------------------------
# Batch tiling: fat tiles, but >= 2 grid steps when possible (v7x has 2 TCs).
# ---------------------------------------------------------------------------
_BIG_TILE_M = 256  # 256 rows of f32[*,128] ~ 32 vregs for h; low spill risk


def _pick_tile_m(M):
    if M <= 16:
        return _round_up(max(M, 1), 8)          # one tiny tile; splitting not worth it
    half = _round_up((M + 1) // 2, 8)           # guarantees >= 2 "parallel" grid steps
    return min(_BIG_TILE_M, half)


# ---------------------------------------------------------------------------
# Jitted forward: pad x -> fused pallas_call -> slice (out, z).
# ---------------------------------------------------------------------------
@partial(jax.jit,
         static_argnames=("n_enc", "n_dec", "in_features", "bottleneck", "out_features"))
def autoencoder_forward_pallas(w_stack, b_stack, x, *, n_enc, n_dec,
                               in_features, bottleneck, out_features):
    n_layers, D, _ = w_stack.shape
    M = x.shape[0]

    tile_m = _pick_tile_m(M)
    M_pad = _round_up(M, tile_m)
    x_pad = jnp.pad(x.astype(jnp.float32),
                    ((0, M_pad - M), (0, D - in_features)))

    n_tanh = (n_enc - 1) + (n_dec - 1)
    cost = pl.CostEstimate(
        flops=2 * M_pad * D * D * n_layers,
        transcendentals=M_pad * D * n_tanh,
        bytes_accessed=4 * (3 * M_pad * D + n_layers * D * D + n_layers * D),
    )

    kernel = partial(_fused_autoencoder_kernel, n_enc=n_enc, n_dec=n_dec)
    out_pad, z_pad = pl.pallas_call(
        kernel,
        out_shape=(
            jax.ShapeDtypeStruct((M_pad, D), jnp.float32),
            jax.ShapeDtypeStruct((M_pad, D), jnp.float32),
        ),
        grid=(M_pad // tile_m,),
        in_specs=[
            pl.BlockSpec((tile_m, D), lambda i: (i, 0)),
            # Constant index maps -> weights/biases stay VMEM-resident across
            # grid steps (single DMA; ~0.4 MiB total, negligible on all gens).
            pl.BlockSpec((n_layers, D, D), lambda i: (0, 0, 0)),
            pl.BlockSpec((n_layers, 1, D), lambda i: (0, 0, 0)),
        ],
        out_specs=(
            pl.BlockSpec((tile_m, D), lambda i: (i, 0)),
            pl.BlockSpec((tile_m, D), lambda i: (i, 0)),
        ),
        compiler_params=pltpu.CompilerParams(dimension_semantics=("parallel",)),
        cost_estimate=cost,
    )(x_pad, w_stack, b_stack)

    return out_pad[:M, :out_features], z_pad[:M, :bottleneck]


# ---------------------------------------------------------------------------
# Parameter construction (PyTorch nn.Linear-style uniform init, W as [in, out]).
# ---------------------------------------------------------------------------
def init_mlp_params(key, layer_sizes):
    params = []
    for idx in range(len(layer_sizes) - 1):
        fan_in, fan_out = layer_sizes[idx], layer_sizes[idx + 1]
        key, kw, kb = jax.random.split(key, 3)
        bound = 1.0 / jnp.sqrt(jnp.float32(fan_in))
        w = jax.random.uniform(kw, (fan_in, fan_out), jnp.float32, -bound, bound)
        b = jax.random.uniform(kb, (fan_out,), jnp.float32, -bound, bound)
        params.append((w, b))
    return params, key


# ---------------------------------------------------------------------------
# Pure-JAX reference for verification.
# ---------------------------------------------------------------------------
def model_ann_ref(params, x):
    n_layers = len(params)
    for idx, (w, b) in enumerate(params):
        x = x @ w + b
        if idx != n_layers - 1:
            x = jnp.tanh(x)
    return x


if __name__ == "__main__":
    # Small shapes consistent with the module.
    batch = 8
    input_size = 64
    encoder_layer_size = [32, 16]
    decoder_layer_size = [16, 32]
    bottleneck = 10

    key = jax.random.PRNGKey(0)

    enc_sizes = [input_size] + encoder_layer_size + [bottleneck]
    dec_sizes = [bottleneck] + decoder_layer_size + [input_size]

    encoder_params, key = init_mlp_params(key, enc_sizes)
    decoder_params, key = init_mlp_params(key, dec_sizes)

    key, kx = jax.random.split(key)
    x = jax.random.normal(kx, (batch, input_size), jnp.float32)

    # One-time packing, then the jitted fused forward.
    w_stack, b_stack, meta = pack_autoencoder_params(
        encoder_params, decoder_params, input_size)
    w_stack = jax.block_until_ready(w_stack)
    b_stack = jax.block_until_ready(b_stack)

    out, z = autoencoder_forward_pallas(w_stack, b_stack, x, **meta)
    out = jax.block_until_ready(out)
    z = jax.block_until_ready(z)

    # Verify against the pure-JAX reference.
    z_ref = model_ann_ref(encoder_params, x)
    out_ref = model_ann_ref(decoder_params, z_ref)

    assert out.shape == (batch, input_size)
    assert z.shape == (batch, bottleneck)
    assert jnp.allclose(z, z_ref, atol=1e-5, rtol=1e-5)
    assert jnp.allclose(out, out_ref, atol=1e-5, rtol=1e-5)

    print("KERNEL_OK")
</pallas_src>

<mosaic_0001>
module attributes {stable_mosaic.version = 11 : i64} {
  func.func @_fused_autoencoder_kernel(%arg0: i32, %arg1: memref<8x128xf32, #tpu.memory_space<vmem>>, %arg2: memref<6x128x128xf32, #tpu.memory_space<vmem>>, %arg3: memref<6x1x128xf32, #tpu.memory_space<vmem>>, %arg4: memref<8x128xf32, #tpu.memory_space<vmem>>, %arg5: memref<8x128xf32, #tpu.memory_space<vmem>>) attributes {dimension_semantics = [#tpu.dimension_semantics<parallel>], iteration_bounds = array<i64: 1>, scalar_prefetch = 0 : i64, scratch_operands = 0 : i64, tpu.core_type = #tpu.core_type<tc>, window_params = [{transform_indices = @transform_0, window_bounds = array<i64: 8, 128>}, {pipeline_mode = #tpu.pipeline_mode<synchronous>, transform_indices = @transform_1, window_bounds = array<i64: 6, 128, 128>}, {pipeline_mode = #tpu.pipeline_mode<synchronous>, transform_indices = @transform_2, window_bounds = array<i64: 6, 1, 128>}, {transform_indices = @transform_3, window_bounds = array<i64: 8, 128>}, {transform_indices = @transform_4, window_bounds = array<i64: 8, 128>}]} {
    %c0 = arith.constant 0 : index
    %c0_0 = arith.constant 0 : index
    %0 = vector.load %arg1[%c0, %c0_0] : memref<8x128xf32, #tpu.memory_space<vmem>>, vector<8x128xf32>
    %c0_1 = arith.constant 0 : index
    %c0_2 = arith.constant 0 : index
    %c0_3 = arith.constant 0 : index
    %1 = vector.load %arg2[%c0_1, %c0_2, %c0_3] : memref<6x128x128xf32, #tpu.memory_space<vmem>>, vector<1x128x128xf32>
    %2 = vector.shape_cast %1 : vector<1x128x128xf32> to vector<128x128xf32>
    %cst = arith.constant dense<0.000000e+00> : vector<8x128xf32>
    %3 = tpu.matmul %0, %2, %cst {dimension_numbers = #tpu.dot_dimension_numbers<[1], [0], [0], [1], [0, 0, 1, 1], [], []>} : vector<8x128xf32>, vector<128x128xf32>, vector<8x128xf32> -> vector<8x128xf32>
    %c0_4 = arith.constant 0 : index
    %c0_5 = arith.constant 0 : index
    %c0_6 = arith.constant 0 : index
    %4 = vector.load %arg3[%c0_4, %c0_5, %c0_6] : memref<6x1x128xf32, #tpu.memory_space<vmem>>, vector<1x1x128xf32>
    %5 = vector.shape_cast %4 : vector<1x1x128xf32> to vector<1x128xf32>
    %6 = vector.broadcast %5 : vector<1x128xf32> to vector<8x128xf32>
    %7 = arith.addf %3, %6 : vector<8x128xf32>
    %8 = math.tanh %7 : vector<8x128xf32>
    %c1 = arith.constant 1 : index
    %c0_7 = arith.constant 0 : index
    %c0_8 = arith.constant 0 : index
    %9 = vector.load %arg2[%c1, %c0_7, %c0_8] : memref<6x128x128xf32, #tpu.memory_space<vmem>>, vector<1x128x128xf32>
    %10 = vector.shape_cast %9 : vector<1x128x128xf32> to vector<128x128xf32>
    %cst_9 = arith.constant dense<0.000000e+00> : vector<8x128xf32>
    %11 = tpu.matmul %8, %10, %cst_9 {dimension_numbers = #tpu.dot_dimension_numbers<[1], [0], [0], [1], [0, 0, 1, 1], [], []>} : vector<8x128xf32>, vector<128x128xf32>, vector<8x128xf32> -> vector<8x128xf32>
    %c1_10 = arith.constant 1 : index
    %c0_11 = arith.constant 0 : index
    %c0_12 = arith.constant 0 : index
    %12 = vector.load %arg3[%c1_10, %c0_11, %c0_12] : memref<6x1x128xf32, #tpu.memory_space<vmem>>, vector<1x1x128xf32>
    %13 = vector.shape_cast %12 : vector<1x1x128xf32> to vector<1x128xf32>
    %14 = vector.broadcast %13 : vector<1x128xf32> to vector<8x128xf32>
    %15 = arith.addf %11, %14 : vector<8x128xf32>
    %16 = math.tanh %15 : vector<8x128xf32>
    %c2 = arith.constant 2 : index
    %c0_13 = arith.constant 0 : index
    %c0_14 = arith.constant 0 : index
    %17 = vector.load %arg2[%c2, %c0_13, %c0_14] : memref<6x128x128xf32, #tpu.memory_space<vmem>>, vector<1x128x128xf32>
    %18 = vector.shape_cast %17 : vector<1x128x128xf32> to vector<128x128xf32>
    %cst_15 = arith.constant dense<0.000000e+00> : vector<8x128xf32>
    %19 = tpu.matmul %16, %18, %cst_15 {dimension_numbers = #tpu.dot_dimension_numbers<[1], [0], [0], [1], [0, 0, 1, 1], [], []>} : vector<8x128xf32>, vector<128x128xf32>, vector<8x128xf32> -> vector<8x128xf32>
    %c2_16 = arith.constant 2 : index
    %c0_17 = arith.constant 0 : index
    %c0_18 = arith.constant 0 : index
    %20 = vector.load %arg3[%c2_16, %c0_17, %c0_18] : memref<6x1x128xf32, #tpu.memory_space<vmem>>, vector<1x1x128xf32>
    %21 = vector.shape_cast %20 : vector<1x1x128xf32> to vector<1x128xf32>
    %22 = vector.broadcast %21 : vector<1x128xf32> to vector<8x128xf32>
    %23 = arith.addf %19, %22 : vector<8x128xf32>
    %c0_19 = arith.constant 0 : index
    %c0_20 = arith.constant 0 : index
    %24 = vector.load %arg5[%c0_19, %c0_20] : memref<8x128xf32, #tpu.memory_space<vmem>>, vector<8x128xf32>
    tpu.vector_store %arg5[%c0_19, %c0_20], %23 {strides = array<i32>} : memref<8x128xf32, #tpu.memory_space<vmem>>, vector<8x128xf32>,
    %c3 = arith.constant 3 : index
    %c0_21 = arith.constant 0 : index
    %c0_22 = arith.constant 0 : index
    %25 = vector.load %arg2[%c3, %c0_21, %c0_22] : memref<6x128x128xf32, #tpu.memory_space<vmem>>, vector<1x128x128xf32>
    %26 = vector.shape_cast %25 : vector<1x128x128xf32> to vector<128x128xf32>
    %cst_23 = arith.constant dense<0.000000e+00> : vector<8x128xf32>
    %27 = tpu.matmul %23, %26, %cst_23 {dimension_numbers = #tpu.dot_dimension_numbers<[1], [0], [0], [1], [0, 0, 1, 1], [], []>} : vector<8x128xf32>, vector<128x128xf32>, vector<8x128xf32> -> vector<8x128xf32>
    %c3_24 = arith.constant 3 : index
    %c0_25 = arith.constant 0 : index
    %c0_26 = arith.constant 0 : index
    %28 = vector.load %arg3[%c3_24, %c0_25, %c0_26] : memref<6x1x128xf32, #tpu.memory_space<vmem>>, vector<1x1x128xf32>
    %29 = vector.shape_cast %28 : vector<1x1x128xf32> to vector<1x128xf32>
    %30 = vector.broadcast %29 : vector<1x128xf32> to vector<8x128xf32>
    %31 = arith.addf %27, %30 : vector<8x128xf32>
    %32 = math.tanh %31 : vector<8x128xf32>
    %c4 = arith.constant 4 : index
    %c0_27 = arith.constant 0 : index
    %c0_28 = arith.constant 0 : index
    %33 = vector.load %arg2[%c4, %c0_27, %c0_28] : memref<6x128x128xf32, #tpu.memory_space<vmem>>, vector<1x128x128xf32>
    %34 = vector.shape_cast %33 : vector<1x128x128xf32> to vector<128x128xf32>
    %cst_29 = arith.constant dense<0.000000e+00> : vector<8x128xf32>
    %35 = tpu.matmul %32, %34, %cst_29 {dimension_numbers = #tpu.dot_dimension_numbers<[1], [0], [0], [1], [0, 0, 1, 1], [], []>} : vector<8x128xf32>, vector<128x128xf32>, vector<8x128xf32> -> vector<8x128xf32>
    %c4_30 = arith.constant 4 : index
    %c0_31 = arith.constant 0 : index
    %c0_32 = arith.constant 0 : index
    %36 = vector.load %arg3[%c4_30, %c0_31, %c0_32] : memref<6x1x128xf32, #tpu.memory_space<vmem>>, vector<1x1x128xf32>
    %37 = vector.shape_cast %36 : vector<1x1x128xf32> to vector<1x128xf32>
    %38 = vector.broadcast %37 : vector<1x128xf32> to vector<8x128xf32>
    %39 = arith.addf %35, %38 : vector<8x128xf32>
    %40 = math.tanh %39 : vector<8x128xf32>
    %c5 = arith.constant 5 : index
    %c0_33 = arith.constant 0 : index
    %c0_34 = arith.constant 0 : index
    %41 = vector.load %arg2[%c5, %c0_33, %c0_34] : memref<6x128x128xf32, #tpu.memory_space<vmem>>, vector<1x128x128xf32>
    %42 = vector.shape_cast %41 : vector<1x128x128xf32> to vector<128x128xf32>
    %cst_35 = arith.constant dense<0.000000e+00> : vector<8x128xf32>
    %43 = tpu.matmul %40, %42, %cst_35 {dimension_numbers = #tpu.dot_dimension_numbers<[1], [0], [0], [1], [0, 0, 1, 1], [], []>} : vector<8x128xf32>, vector<128x128xf32>, vector<8x128xf32> -> vector<8x128xf32>
    %c5_36 = arith.constant 5 : index
    %c0_37 = arith.constant 0 : index
    %c0_38 = arith.constant 0 : index
    %44 = vector.load %arg3[%c5_36, %c0_37, %c0_38] : memref<6x1x128xf32, #tpu.memory_space<vmem>>, vector<1x1x128xf32>
    %45 = vector.shape_cast %44 : vector<1x1x128xf32> to vector<1x128xf32>
    %46 = vector.broadcast %45 : vector<1x128xf32> to vector<8x128xf32>
    %47 = arith.addf %43, %46 : vector<8x128xf32>
    %c0_39 = arith.constant 0 : index
    %c0_40 = arith.constant 0 : index
    %48 = vector.load %arg4[%c0_39, %c0_40] : memref<8x128xf32, #tpu.memory_space<vmem>>, vector<8x128xf32>
    tpu.vector_store %arg4[%c0_39, %c0_40], %47 {strides = array<i32>} : memref<8x128xf32, #tpu.memory_space<vmem>>, vector<8x128xf32>,
    return
  }
  func.func @transform_0(%arg0: i32) -> (i32, i32) {
    %c0_i32 = arith.constant 0 : i32
    %c0_i32_0 = arith.constant 0 : i32
    return %arg0, %c0_i32 : i32, i32
  }
  func.func @transform_1(%arg0: i32) -> (i32, i32, i32) {
    %c0_i32 = arith.constant 0 : i32
    %c0_i32_0 = arith.constant 0 : i32
    %c0_i32_1 = arith.constant 0 : i32
    %c0_i32_2 = arith.constant 0 : i32
    return %c0_i32, %c0_i32_0, %c0_i32_1 : i32, i32, i32
  }
  func.func @transform_2(%arg0: i32) -> (i32, i32, i32) {
    %c0_i32 = arith.constant 0 : i32
    %c0_i32_0 = arith.constant 0 : i32
    %c0_i32_1 = arith.constant 0 : i32
    %c0_i32_2 = arith.constant 0 : i32
    return %c0_i32, %c0_i32_0, %c0_i32_1 : i32, i32, i32
  }
  func.func @transform_3(%arg0: i32) -> (i32, i32) {
    %c0_i32 = arith.constant 0 : i32
    %c0_i32_0 = arith.constant 0 : i32
    return %arg0, %c0_i32 : i32, i32
  }
  func.func @transform_4(%arg0: i32) -> (i32, i32) {
    %c0_i32 = arith.constant 0 : i32
    %c0_i32_0 = arith.constant 0 : i32
    return %arg0, %c0_i32 : i32, i32
  }
}

</mosaic_0001>

<bundles_post_ra>
// kernel: autoencoder_forward_pallas.1
= control target key start
LH: loop header
LB: loop body
LE: loop exit
PB: predicated region body
PF: predicated region fallthrough
CT: control target
= control target key end

     0   :  { %10 = vsyncpa [#allocation3], 0  ;;  %s486_s0 = inlined_call_operand.vmem [shape: f32[8,128], index: 0, kind: input, shape index: {}]   ;;  %s487_s1 = inlined_call_operand.hbm [shape: f32[6,128,128], index: 1, kind: input, shape index: {}]   ;;  %s488_s2 = inlined_call_operand.vmem [shape: f32[6,1,128], index: 2, kind: input, shape index: {}]   ;;  %s489_s3 = inlined_call_operand.hbm [shape: f32[8,128], index: 3, kind: output, shape index: {0}]   ;;  %s490_s4 = inlined_call_operand.hbm [shape: f32[8,128], index: 4, kind: output, shape index: {1}]  }
   0x1   :  { %11 = vsyncpa [#allocation4], 0 }
   0x2   :  { %12 = vsyncpa [#allocation7], 0  ;;  %s19_s17 = sshll.u32 %s487_s1, 4  ;;  %s426_s18 = smov [#allocation2]   ;;  %s20_s17 = int_to_ptr.hbm [resolvable:$true] %s19_s17 }
   0x3   :  { %s21_s19 = sshll.u32 %s426_s18, 4  ;;  %s427_s20 = smov 128   ;;  %s22_s19 = int_to_ptr.vmem [resolvable:$true] %s21_s19 }
   0x4   :  { %s428_s21 = smov 8  }
   0x5   :  { %27 = dma.hbm_to_vmem [thread:$0]  %s20_s17, 12288, %s22_s19, [#allocation3], %s427_s20, %s427_s20, %s428_s21  }
   0x6   :  { %420 = dma.done.wait [#allocation3], 12288  }
   0x7   :  { %421 = vsyncadd [#allocation3], 4294955008  ;;  %v50_v0 = vld [vmem:[#allocation2 + $0x78] sm:$0xff]  ;;  %v49_v1 = vld [vmem:[#allocation2 + $0x70] sm:$0xff]  ;;  %s429_s6 = smov [#allocation6]   ;;  %s309_s10 = sshll.u32 %s490_s4, 4  ;;  %s310_s10 = int_to_ptr.hbm [resolvable:$true] %s309_s10 }
   0x8   :  { %55 = vmatpush.msra.mxu0 %v50_v0  ;;  %v48_v2 = vld [vmem:[#allocation2 + $0x68] sm:$0xff]  ;;  %v47_v3 = vld [vmem:[#allocation2 + $0x60] sm:$0xff]  ;;  %v92_v4 = vld [vmem:[#allocation2 + $0xf8] sm:$0xff]  ;;  %s307_s7 = sshll.u32 %s429_s6, 4  ;;  %s430_s13 = smov [#allocation5]   ;;  %s308_s7 = int_to_ptr.vmem [resolvable:$true] %s307_s7 }
   0x9   :  { %v46_v5 = vld [vmem:[#allocation2 + $0x58] sm:$0xff]  ;;  %98 = vmatpush.msra.mxu1 %v92_v4  ;;  %v91_v6 = vld [vmem:[#allocation2 + $0xf0] sm:$0xff]  ;;  %v90_v7 = vld [vmem:[#allocation2 + $0xe8] sm:$0xff]  ;;  %s296_s14 = sshll.u32 %s430_s13, 4  ;;  %s298_s17 = sshll.u32 %s489_s3, 4  ;;  %s297_s14 = int_to_ptr.vmem [resolvable:$true] %s296_s14  ;;  %s299_s17 = int_to_ptr.hbm [resolvable:$true] %s298_s17 }
   0xa   :  { %56 = vmatpush.msra.mxu0 %v49_v1  ;;  %v45_v8 = vld [vmem:[#allocation2 + $0x50] sm:$0xff]  ;;  %v44_v9 = vld [vmem:[#allocation2 + $0x48] sm:$0xff]  ;;  %v89_v10 = vld [vmem:[#allocation2 + $0xe0] sm:$0xff] }
   0xb   :  { %99 = vmatpush.msra.mxu1 %v91_v6  ;;  %v88_v11 = vld [vmem:[#allocation2 + $0xd8] sm:$0xff]  ;;  %v43_v12 = vld [vmem:[#allocation2 + $0x40] sm:$0xff]  ;;  %v87_v13 = vld [vmem:[#allocation2 + $0xd0] sm:$0xff] }
   0xc   :  { %57 = vmatpush.msra.mxu0 %v48_v2  ;;  %v42_v14 = vld [vmem:[#allocation2 + $0x38] sm:$0xff]  ;;  %v86_v15 = vld [vmem:[#allocation2 + $0xc8] sm:$0xff]  ;;  %v41_v16 = vld [vmem:[#allocation2 + $0x30] sm:$0xff] }
   0xd   :  { %100 = vmatpush.msra.mxu1 %v90_v7  ;;  %v85_v17 = vld [vmem:[#allocation2 + $0xc0] sm:$0xff]  ;;  %v40_v18 = vld [vmem:[#allocation2 + $0x28] sm:$0xff]  ;;  %v84_v19 = vld [vmem:[#allocation2 + $0xb8] sm:$0xff] }
   0xe   :  { %58 = vmatpush.msra.mxu0 %v47_v3  ;;  %v39_v20 = vld [vmem:[#allocation2 + $0x20] sm:$0xff]  ;;  %v83_v21 = vld [vmem:[#allocation2 + $0xb0] sm:$0xff]  ;;  %v38_v22 = vld [vmem:[#allocation2 + $0x18] sm:$0xff] }
   0xf   :  { %101 = vmatpush.msra.mxu1 %v89_v10  ;;  %v82_v23 = vld [vmem:[#allocation2 + $0xa8] sm:$0xff]  ;;  %v37_v24 = vld [vmem:[#allocation2 + $0x10] sm:$0xff]  ;;  %v35_v26 = vld [vmem:[#allocation2] sm:$0xff] }
  0x10   :  { %59 = vmatpush.msra.mxu0 %v46_v5  ;;  %v36_v25 = vld [vmem:[#allocation2 + $0x8] sm:$0xff]  ;;  %v34_v27 = vld [vmem:[%s486_s0] sm:$0xff]  ;;  %v80_v29 = vld [vmem:[#allocation2 + $0x98] sm:$0xff] }
  0x11   :  { %102 = vmatpush.msra.mxu1 %v88_v11  ;;  %v81_v28 = vld [vmem:[#allocation2 + $0xa0] sm:$0xff]  ;;  %v79_v30 = vld [vmem:[#allocation2 + $0x90] sm:$0xff]  ;;  %v78_v31 = vld [vmem:[#allocation2 + $0x88] sm:$0xff] }
  0x12   :  { %60 = vmatpush.msra.mxu0 %v45_v8  ;;  %v77_v32 = vld [vmem:[#allocation2 + $0x80] sm:$0xff]  ;;  %v135_v33 = vld [vmem:[#allocation2 + $0x178] sm:$0xff]  ;;  %v134_v34 = vld [vmem:[#allocation2 + $0x170] sm:$0xff] }
  0x13   :  { %103 = vmatpush.msra.mxu1 %v87_v13  ;;  %141 = vmatpush.msra.mxu2 %v135_v33  ;;  %v133_v35 = vld [vmem:[#allocation2 + $0x168] sm:$0xff]  ;;  %v132_v36 = vld [vmem:[#allocation2 + $0x160] sm:$0xff]  ;;  %v131_v37 = vld [vmem:[#allocation2 + $0x158] sm:$0xff] }
  0x14   :  { %61 = vmatpush.msra.mxu0 %v44_v9  ;;  %v130_v38 = vld [vmem:[#allocation2 + $0x150] sm:$0xff]  ;;  %v129_v39 = vld [vmem:[#allocation2 + $0x148] sm:$0xff]  ;;  %v128_v40 = vld [vmem:[#allocation2 + $0x140] sm:$0xff] }
  0x15   :  { %104 = vmatpush.msra.mxu1 %v86_v15  ;;  %142 = vmatpush.msra.mxu2 %v134_v34  ;;  %v127_v41 = vld [vmem:[#allocation2 + $0x138] sm:$0xff]  ;;  %v126_v42 = vld [vmem:[#allocation2 + $0x130] sm:$0xff]  ;;  %v125_v43 = vld [vmem:[#allocation2 + $0x128] sm:$0xff] }
  0x16   :  { %62 = vmatpush.msra.mxu0 %v43_v12  ;;  %v334_v44 = vld [vmem:[%s488_s2] ss:$0 sm:$0xff]  ;;  %v123_v49 = vld [vmem:[#allocation2 + $0x118] sm:$0xff]  ;;  %v122_v50 = vld [vmem:[#allocation2 + $0x110] sm:$0xff] }
  0x17   :  { %105 = vmatpush.msra.mxu1 %v85_v17  ;;  %143 = vmatpush.msra.mxu2 %v133_v35  ;;  %v124_v48 = vld [vmem:[#allocation2 + $0x120] sm:$0xff]  ;;  %v121_v51 = vld [vmem:[#allocation2 + $0x108] sm:$0xff]  ;;  %v178_v53 = vld [vmem:[#allocation2 + $0x1f8] sm:$0xff] }
  0x18   :  { %63 = vmatpush.msra.mxu0 %v42_v14  ;;  %v120_v52 = vld [vmem:[#allocation2 + $0x100] sm:$0xff]  ;;  %v177_v54 = vld [vmem:[#allocation2 + $0x1f0] sm:$0xff]  ;;  %184 = vmatpush.msra.mxu3 %v178_v53  ;;  %v176_v55 = vld [vmem:[#allocation2 + $0x1e8] sm:$0xff] }
  0x19   :  { %106 = vmatpush.msra.mxu1 %v84_v19  ;;  %144 = vmatpush.msra.mxu2 %v132_v36  ;;  %v175_v56 = vld [vmem:[#allocation2 + $0x1e0] sm:$0xff]  ;;  %v174_v57 = vld [vmem:[#allocation2 + $0x1d8] sm:$0xff]  ;;  %v173_v58 = vld [vmem:[#allocation2 + $0x1d0] sm:$0xff] }
  0x1a   :  { %64 = vmatpush.msra.mxu0 %v41_v16  ;;  %185 = vmatpush.msra.mxu3 %v177_v54  ;;  %v172_v59 = vld [vmem:[#allocation2 + $0x1c8] sm:$0xff]  ;;  %v171_v60 = vld [vmem:[#allocation2 + $0x1c0] sm:$0xff]  ;;  %v170_v61 = vld [vmem:[#allocation2 + $0x1b8] sm:$0xff] }
  0x1b   :  { %107 = vmatpush.msra.mxu1 %v83_v21  ;;  %145 = vmatpush.msra.mxu2 %v131_v37  ;;  %v169_v62 = vld [vmem:[#allocation2 + $0x1b0] sm:$0xff]  ;;  %v168_v63 = vld [vmem:[#allocation2 + $0x1a8] sm:$0xff]  ;;  %v335_v0 = vld [vmem:[%s488_s2 + $0x1] ss:$0 sm:$0xff] }
  0x1c   :  { %65 = vmatpush.msra.mxu0 %v40_v18  ;;  %186 = vmatpush.msra.mxu3 %v176_v55  ;;  %v167_v1 = vld [vmem:[#allocation2 + $0x1a0] sm:$0xff]  ;;  %v166_v3 = vld [vmem:[#allocation2 + $0x198] sm:$0xff]  ;;  %v165_v5 = vld [vmem:[#allocation2 + $0x190] sm:$0xff] }
  0x1d   :  { %108 = vmatpush.msra.mxu1 %v82_v23  ;;  %146 = vmatpush.msra.mxu2 %v130_v38  ;;  %v164_v7 = vld [vmem:[#allocation2 + $0x188] sm:$0xff]  ;;  %v163_v8 = vld [vmem:[#allocation2 + $0x180] sm:$0xff]  ;;  %v221_v9 = vld [vmem:[#allocation2 + $0x278] sm:$0xff] }
  0x1e   :  { %66 = vmatpush.msra.mxu0 %v39_v20  ;;  %187 = vmatpush.msra.mxu3 %v175_v56  ;;  %v220_v10 = vld [vmem:[#allocation2 + $0x270] sm:$0xff]  ;;  %v219_v11 = vld [vmem:[#allocation2 + $0x268] sm:$0xff]  ;;  %v218_v12 = vld [vmem:[#allocation2 + $0x260] sm:$0xff] }
  0x1f   :  { %109 = vmatpush.msra.mxu1 %v81_v28  ;;  %147 = vmatpush.msra.mxu2 %v129_v39  ;;  %v217_v13 = vld [vmem:[#allocation2 + $0x258] sm:$0xff]  ;;  %v216_v14 = vld [vmem:[#allocation2 + $0x250] sm:$0xff]  ;;  %v215_v15 = vld [vmem:[#allocation2 + $0x248] sm:$0xff] }
  0x20   :  { %67 = vmatpush.msra.mxu0 %v38_v22  ;;  %188 = vmatpush.msra.mxu3 %v174_v57  ;;  %v214_v16 = vld [vmem:[#allocation2 + $0x240] sm:$0xff]  ;;  %v213_v17 = vld [vmem:[#allocation2 + $0x238] sm:$0xff]  ;;  %v212_v18 = vld [vmem:[#allocation2 + $0x230] sm:$0xff] }
  0x21   :  { %110 = vmatpush.msra.mxu1 %v80_v29  ;;  %148 = vmatpush.msra.mxu2 %v128_v40  ;;  %v211_v19 = vld [vmem:[#allocation2 + $0x228] sm:$0xff]  ;;  %v336_v20 = vld [vmem:[%s488_s2 + $0x2] ss:$0 sm:$0xff]  ;;  %v264_v28 = vld [vmem:[#allocation2 + $0x2f8] sm:$0xff] }
  0x22   :  { %68 = vmatpush.msra.mxu0 %v37_v24  ;;  %189 = vmatpush.msra.mxu3 %v173_v58  ;;  %v210_v23 = vld [vmem:[#allocation2 + $0x220] sm:$0xff]  ;;  %v209_v24 = vld [vmem:[#allocation2 + $0x218] sm:$0xff]  ;;  %v263_v29 = vld [vmem:[#allocation2 + $0x2f0] sm:$0xff] }
  0x23   :  { %111 = vmatpush.msra.mxu1 %v79_v30  ;;  %149 = vmatpush.msra.mxu2 %v127_v41  ;;  %v262_v30 = vld [vmem:[#allocation2 + $0x2e8] sm:$0xff]  ;;  %v259_v33 = vld [vmem:[#allocation2 + $0x2d0] sm:$0xff]  ;;  %v257_v35 = vld [vmem:[#allocation2 + $0x2c0] sm:$0xff] }
  0x24   :  { %69 = vmatpush.msra.mxu0 %v36_v25  ;;  %190 = vmatpush.msra.mxu3 %v172_v59  ;;  %v208_v25 = vld [vmem:[#allocation2 + $0x210] sm:$0xff]  ;;  %v258_v34 = vld [vmem:[#allocation2 + $0x2c8] sm:$0xff]  ;;  %v256_v36 = vld [vmem:[#allocation2 + $0x2b8] sm:$0xff] }
  0x25   :  { %112 = vmatpush.msra.mxu1 %v78_v31  ;;  %150 = vmatpush.msra.mxu2 %v126_v42  ;;  %v261_v31 = vld [vmem:[#allocation2 + $0x2e0] sm:$0xff]  ;;  %v255_v37 = vld [vmem:[#allocation2 + $0x2b0] sm:$0xff]  ;;  %v254_v38 = vld [vmem:[#allocation2 + $0x2a8] sm:$0xff] }
  0x26   :  { %70 = vmatpush.msra.mxu0 %v35_v26  ;;  %191 = vmatpush.msra.mxu3 %v171_v60  ;;  %v207_v26 = vld [vmem:[#allocation2 + $0x208] sm:$0xff]  ;;  %v337_v39 = vld [vmem:[%s488_s2 + $0x3] ss:$0 sm:$0xff] }
  0x27   :  { %71 = vmatmul.f32.vlgmr.msra.gmra.mxu0 %v34_v27  ;;  %113 = vmatpush.msra.mxu1 %v77_v32  ;;  %v206_v27 = vld [vmem:[#allocation2 + $0x200] sm:$0xff]  ;;  %v260_v32 = vld [vmem:[#allocation2 + $0x2d8] sm:$0xff] }
  0x28   :  { %151 = vmatpush.msra.mxu2 %v125_v43  ;;  %192 = vmatpush.msra.mxu3 %v170_v61  ;;  %v253_v43 = vld [vmem:[#allocation2 + $0x2a0] sm:$0xff] }
  0x29   :  { %227 = vmatpush.msrb.mxu0 %v221_v9  ;;  %270 = vmatpush.msrb.mxu1 %v264_v28 }
  0x2a   :  { %152 = vmatpush.msra.mxu2 %v124_v48  ;;  %193 = vmatpush.msra.mxu3 %v169_v62  ;;  %v338_v48 = vld [vmem:[%s488_s2 + $0x4] ss:$0 sm:$0xff] }
  0x2b   :  { %228 = vmatpush.msrb.mxu0 %v220_v10  ;;  %271 = vmatpush.msrb.mxu1 %v263_v29 }
  0x2c   :  { %153 = vmatpush.msra.mxu2 %v123_v49  ;;  %194 = vmatpush.msra.mxu3 %v168_v63 }
  0x2d   :  { %229 = vmatpush.msrb.mxu0 %v219_v11  ;;  %272 = vmatpush.msrb.mxu1 %v262_v30 }
  0x2e   :  { %154 = vmatpush.msra.mxu2 %v122_v50  ;;  %195 = vmatpush.msra.mxu3 %v167_v1 }
  0x2f   :  { %230 = vmatpush.msrb.mxu0 %v218_v12  ;;  %273 = vmatpush.msrb.mxu1 %v261_v31 }
  0x30   :  { %155 = vmatpush.msra.mxu2 %v121_v51  ;;  %196 = vmatpush.msra.mxu3 %v166_v3 }
  0x31   :  { %231 = vmatpush.msrb.mxu0 %v217_v13  ;;  %274 = vmatpush.msrb.mxu1 %v260_v32 }
  0x32   :  { %156 = vmatpush.msra.mxu2 %v120_v52  ;;  %197 = vmatpush.msra.mxu3 %v165_v5  ;;  %v339_v52 = vld [vmem:[%s488_s2 + $0x5] ss:$0 sm:$0xff] }
  0x33   :  { %232 = vmatpush.msrb.mxu0 %v216_v14  ;;  %275 = vmatpush.msrb.mxu1 %v259_v33 }
  0x34   :  { %198 = vmatpush.msra.mxu3 %v164_v7 }
  0x35   :  { %233 = vmatpush.msrb.mxu0 %v215_v15  ;;  %276 = vmatpush.msrb.mxu1 %v258_v34 }
  0x36   :  { %199 = vmatpush.msra.mxu3 %v163_v8 }
  0x37   :  { %234 = vmatpush.msrb.mxu0 %v214_v16  ;;  %277 = vmatpush.msrb.mxu1 %v257_v35 }
  0x39   :  { %235 = vmatpush.msrb.mxu0 %v213_v17  ;;  %278 = vmatpush.msrb.mxu1 %v256_v36 }
  0x3b   :  { %236 = vmatpush.msrb.mxu0 %v212_v18  ;;  %279 = vmatpush.msrb.mxu1 %v255_v37 }
  0x3d   :  { %237 = vmatpush.msrb.mxu0 %v211_v19  ;;  %280 = vmatpush.msrb.mxu1 %v254_v38 }
  0x3f   :  { %238 = vmatpush.msrb.mxu0 %v210_v23  ;;  %281 = vmatpush.msrb.mxu1 %v253_v43 }
  0x41   :  { %239 = vmatpush.msrb.mxu0 %v209_v24 }
  0x43   :  { %240 = vmatpush.msrb.mxu0 %v208_v25 }
  0x45   :  { %241 = vmatpush.msrb.mxu0 %v207_v26 }
  0x47   :  { %242 = vmatpush.msrb.mxu0 %v206_v27 }
  0xa4   :  { %v72_v45 = vpop.f32.mrf.mxu0 }
  0xa5   :  { %v73_v46 = vadd.f32 %v334_v44, %v72_v45  ;;  %v252_v44 = vld [vmem:[#allocation2 + $0x298] sm:$0xff]  ;;  %v251_v45 = vld [vmem:[#allocation2 + $0x290] sm:$0xff] }
  0xa6   :  { %282 = vmatpush.msrb.mxu1 %v252_v44 }
  0xa7   :  { %340 = vtanh.f32 %v73_v46  ;;  %v250_v46 = vld [vmem:[#allocation2 + $0x288] sm:$0xff] }
  0xa8   :  { %283 = vmatpush.msrb.mxu1 %v251_v45 }
  0xaa   :  { %284 = vmatpush.msrb.mxu1 %v250_v46 }
  0xad   :  { %v341_v47 = vpop.eup %340 }
  0xae   :  { %114 = vmatmul.f32.vlgmr.msra.gmra.mxu1 %v341_v47  ;;  %v249_v47 = vld [vmem:[#allocation2 + $0x280] sm:$0xff] }
  0xaf   :  { %285 = vmatpush.msrb.mxu1 %v249_v47 }
 0x12b   :  { %v115_v2 = vpop.f32.mrf.mxu1 }
 0x12c   :  { %v116_v4 = vadd.f32 %v335_v0, %v115_v2 }
 0x12e   :  { %342 = vtanh.f32 %v116_v4 }
 0x134   :  { %v343_v6 = vpop.eup %342 }
 0x135   :  { %157 = vmatmul.f32.vlgmr.msra.gmra.mxu2 %v343_v6 }
 0x1b8   :  { %v158_v21 = vpop.f32.mrf.mxu2 }
 0x1b9   :  { %v159_v22 = vadd.f32 %v336_v20, %v158_v21 }
 0x1bb   :  { %161 = vst [vmem:[#allocation6] sm:$0xff] %v159_v22  ;;  %200 = vmatmul.f32.vlgmr.msra.gmra.mxu3 %v159_v22 }
 0x1bc   :  { %312 = dma.vmem_to_hbm [thread:$0]  %s308_s7, 128, %s310_s10, [#allocation7]  }
 0x23e   :  { %v201_v40 = vpop.f32.mrf.mxu3 }
 0x23f   :  { %v202_v41 = vadd.f32 %v337_v39, %v201_v40 }
 0x241   :  { %344 = vtanh.f32 %v202_v41 }
 0x247   :  { %v345_v42 = vpop.eup %344 }
 0x248   :  { %243 = vmatmul.f32.vlgmr.msrb.gmra.mxu0 %v345_v42 }
 0x2c5   :  { %v244_v49 = vpop.f32.mrf.mxu0 }
 0x2c6   :  { %v245_v50 = vadd.f32 %v338_v48, %v244_v49 }
 0x2c8   :  { %346 = vtanh.f32 %v245_v50 }
 0x2ce   :  { %v347_v51 = vpop.eup %346 }
 0x2cf   :  { %286 = vmatmul.f32.vlgmr.msrb.gmra.mxu1 %v347_v51 }
 0x34c   :  { %v287_v53 = vpop.f32.mrf.mxu1 }
 0x34d   :  { %v288_v54 = vadd.f32 %v339_v52, %v287_v53 }
 0x34f   :  { %290 = vst [vmem:[#allocation5] sm:$0xff] %v288_v54 }
 0x350   :  { %301 = dma.vmem_to_hbm [thread:$0]  %s297_s14, 128, %s299_s17, [#allocation4]  }
 0x351   :  { %422 = dma.done.wait [#allocation4], 128  }
 0x352   :  { %423 = vsyncadd [#allocation4], 4294967168 }
 0x353   :  { %424 = dma.done.wait [#allocation7], 128  }
 0x354   :  { %425 = vsyncadd [#allocation7], 4294967168 }
 0x355   :  { %321 = vsyncpa [#allocation3], 1 }
 0x356   :  { %322 = vsyncpa [#allocation4], 1 }
 0x357   :  { %323 = vsyncpa [#allocation7], 1 }

</bundles_post_ra>
